<compile_context>
chip_gen: v5e
topology: v5e:2x2
jax: 0.10.0
libtpu: 0.0.40
codegen_flags: <defaults>
</compile_context>

<pallas_src>
import functools
import math

import jax
import jax.numpy as jnp
from jax.experimental import pallas as pl
from jax.experimental.pallas import tpu as pltpu

LN_EPS = 1e-5


def _hw_defaults():
    """Pick (TILE_M, vmem_limit_bytes) from the part's physical VMEM."""
    try:
        vmem_cap = int(pltpu.get_tpu_info().vmem_capacity_bytes)
    except Exception:  # conservative fallback (v7x-safe)
        vmem_cap = 64 * 1024 * 1024
    if vmem_cap >= 128 * 1024 * 1024:   # v5e / v6e: mem-bound trunk, go bigger
        return 512, 64 * 1024 * 1024
    return 256, 32 * 1024 * 1024        # v7x-class: 64 MiB physical VMEM


TILE_M, VMEM_LIMIT = _hw_defaults()


def _cparams(dimension_semantics):
    return pltpu.CompilerParams(dimension_semantics=dimension_semantics,
                                vmem_limit_bytes=VMEM_LIMIT)


def _row_tiling(M):
    """Return (tile_m, padded_M).  Pads M up to a tile multiple (never falls
    back to a huge full-M block for large M)."""
    if M % TILE_M == 0:
        return TILE_M, M
    if M <= TILE_M:
        return M, M                     # single full-M block (always legal)
    pM = ((M + TILE_M - 1) // TILE_M) * TILE_M
    return TILE_M, pM


def _pad_rows(x, pM):
    M = x.shape[0]
    return x if pM == M else jnp.pad(x, ((0, pM - M), (0, 0)))


# ----------------------------------------------------------------------------
# Fused [LayerNorm] -> matmul -> activation kernel   (grid: M-tiles only;
# weight/bias blocks have constant index maps -> stay VMEM-resident)
# ----------------------------------------------------------------------------

def _fused_matmul_kernel(*refs, pre_ln, activation, eps):
    if pre_ln:
        x_ref, g_ref, b_ref, w_ref, bias_ref, o_ref = refs
    else:
        x_ref, w_ref, bias_ref, o_ref = refs
    x = x_ref[...].astype(jnp.float32)
    if pre_ln:                                    # LayerNorm fused into the matmul
        mean = jnp.mean(x, axis=-1, keepdims=True)
        var = jnp.mean((x - mean) ** 2, axis=-1, keepdims=True)
        x = (x - mean) * jax.lax.rsqrt(var + eps)
        x = x * g_ref[...] + b_ref[...]
    # bf16 MXU inputs (weights are stored bf16), f32 accumulation.
    y = jnp.dot(x.astype(w_ref.dtype), w_ref[...],
                preferred_element_type=jnp.float32)
    y = y + bias_ref[...]
    if activation == "relu":
        y = jnp.maximum(y, 0.0)
    elif activation == "silu":
        y = y * jax.nn.sigmoid(y)
    o_ref[...] = y.astype(o_ref.dtype)


def fused_matmul(x, w, b, *, gamma=None, beta=None, activation="none",
                 out_dtype=jnp.float32):
    """o = act([LN](x) @ w + b).  x:(M,K); w:(K,N); b/gamma/beta:(1,*)."""
    M, K = x.shape
    N = w.shape[1]
    tm, pM = _row_tiling(M)
    xp = _pad_rows(x, pM)
    pre_ln = gamma is not None
    in_specs = [pl.BlockSpec((tm, K), lambda i: (i, 0))]
    args = [xp]
    if pre_ln:
        in_specs += [pl.BlockSpec((1, K), lambda i: (0, 0)),
                     pl.BlockSpec((1, K), lambda i: (0, 0))]
        args += [gamma, beta]
    # Full (K, N) weight block, constant index -> DMA'd once, resident for all
    # M tiles (weights here are at most a few MiB in bf16).
    in_specs += [pl.BlockSpec((K, N), lambda i: (0, 0)),
                 pl.BlockSpec((1, N), lambda i: (0, 0))]
    args += [w, b]
    out = pl.pallas_call(
        functools.partial(_fused_matmul_kernel, pre_ln=pre_ln,
                          activation=activation, eps=LN_EPS),
        out_shape=jax.ShapeDtypeStruct((pM, N), out_dtype),
        grid=(pM // tm,),
        in_specs=in_specs,
        out_specs=pl.BlockSpec((tm, N), lambda i: (i, 0)),
        compiler_params=_cparams(("parallel",)),
    )(*args)
    return out if pM == M else out[:M]


# ----------------------------------------------------------------------------
# LayerNorm -> pointwise conv -> GLU kernel (two lane-aligned weight halves)
# ----------------------------------------------------------------------------

def _ln_glu_matmul_kernel(x_ref, g_ref, b_ref, wa_ref, ba_ref, wg_ref, bg_ref,
                          o_ref, *, eps):
    x = x_ref[...].astype(jnp.float32)
    mean = jnp.mean(x, axis=-1, keepdims=True)
    var = jnp.mean((x - mean) ** 2, axis=-1, keepdims=True)
    xn = (x - mean) * jax.lax.rsqrt(var + eps)
    xn = (xn * g_ref[...] + b_ref[...]).astype(wa_ref.dtype)
    a = jnp.dot(xn, wa_ref[...], preferred_element_type=jnp.float32) + ba_ref[...]
    gate = jnp.dot(xn, wg_ref[...], preferred_element_type=jnp.float32) + bg_ref[...]
    o_ref[...] = (a * jax.nn.sigmoid(gate)).astype(o_ref.dtype)


def ln_glu_matmul(x, wa, ba, wg, bg, *, gamma, beta, out_dtype=jnp.bfloat16):
    M, K = x.shape
    N = wa.shape[1]
    tm, pM = _row_tiling(M)
    xp = _pad_rows(x, pM)
    out = pl.pallas_call(
        functools.partial(_ln_glu_matmul_kernel, eps=LN_EPS),
        out_shape=jax.ShapeDtypeStruct((pM, N), out_dtype),
        grid=(pM // tm,),
        in_specs=[
            pl.BlockSpec((tm, K), lambda i: (i, 0)),
            pl.BlockSpec((1, K), lambda i: (0, 0)),
            pl.BlockSpec((1, K), lambda i: (0, 0)),
            pl.BlockSpec((K, N), lambda i: (0, 0)),    # resident weights
            pl.BlockSpec((1, N), lambda i: (0, 0)),
            pl.BlockSpec((K, N), lambda i: (0, 0)),
            pl.BlockSpec((1, N), lambda i: (0, 0)),
        ],
        out_specs=pl.BlockSpec((tm, N), lambda i: (i, 0)),
        compiler_params=_cparams(("parallel",)),
    )(xp, gamma, beta, wa, ba, wg, bg)
    return out if pM == M else out[:M]


# ----------------------------------------------------------------------------
# Matmul with residual / scale / optional post-LN epilogue.  1-D grid over M
# tiles, full-K full-N resident weight (no K-tiling / accumulator scratch --
# every weight in this model fits VMEM whole).
# ----------------------------------------------------------------------------

def _matmul_residual_kernel(*refs, scale, post_ln, eps):
    if post_ln:
        x_ref, w_ref, bias_ref, res_ref, g_ref, b_ref, o_ref = refs
    else:
        x_ref, w_ref, bias_ref, res_ref, o_ref = refs
        g_ref = b_ref = None
    y = jnp.dot(x_ref[...].astype(w_ref.dtype), w_ref[...],
                preferred_element_type=jnp.float32)
    y = res_ref[...].astype(jnp.float32) + scale * (y + bias_ref[...])
    if post_ln:                                   # final block LayerNorm fused here
        mean = jnp.mean(y, axis=-1, keepdims=True)
        var = jnp.mean((y - mean) ** 2, axis=-1, keepdims=True)
        y = (y - mean) * jax.lax.rsqrt(var + eps)
        y = y * g_ref[...] + b_ref[...]
    o_ref[...] = y.astype(o_ref.dtype)


def matmul_residual(x, w, b, res, *, scale=1.0, gamma=None, beta=None):
    """o = [LN]( res + scale * (x @ w + b) ).  Output stays f32 (residual carry)."""
    M, K = x.shape
    N = w.shape[1]
    tm, pM = _row_tiling(M)
    xp, resp = _pad_rows(x, pM), _pad_rows(res, pM)
    post_ln = gamma is not None
    in_specs = [
        pl.BlockSpec((tm, K), lambda i: (i, 0)),
        pl.BlockSpec((K, N), lambda i: (0, 0)),    # resident weight
        pl.BlockSpec((1, N), lambda i: (0, 0)),
        pl.BlockSpec((tm, N), lambda i: (i, 0)),
    ]
    args = [xp, w, b, resp]
    if post_ln:
        in_specs += [pl.BlockSpec((1, N), lambda i: (0, 0)),
                     pl.BlockSpec((1, N), lambda i: (0, 0))]
        args += [gamma, beta]
    out = pl.pallas_call(
        functools.partial(_matmul_residual_kernel, scale=scale,
                          post_ln=post_ln, eps=LN_EPS),
        out_shape=jax.ShapeDtypeStruct((pM, N), jnp.float32),
        grid=(pM // tm,),
        in_specs=in_specs,
        out_specs=pl.BlockSpec((tm, N), lambda i: (i, 0)),
        compiler_params=_cparams(("parallel",)),
    )(*args)
    return out if pM == M else out[:M]


# ----------------------------------------------------------------------------
# Multi-head self-attention: one kernel invocation per batch element,
# all heads processed inside, packed (T, D) lane-dense output store,
# bf16 outputs (attention probs stored bf16 -> halves the O(B*H*T^2) writeback).
# ----------------------------------------------------------------------------

def _attention_kernel(qkv_ref, o_ref, att_ref, *, num_heads, dim):
    qkv = qkv_ref[0]                              # (T, 3D) bf16, scale folded into Wq
    dh = dim // num_heads
    outs = []
    for h in range(num_heads):                    # static unroll, small H
        qh = qkv[:, h * dh:(h + 1) * dh]
        kh = qkv[:, dim + h * dh:dim + (h + 1) * dh]
        vh = qkv[:, 2 * dim + h * dh:2 * dim + (h + 1) * dh]
        # Contract the head dim of Q and K directly: no explicit (T, dh)
        # transpose is materialized; Mosaic folds it into the MXU feed.
        s = jax.lax.dot_general(qh, kh, (((1,), (1,)), ((), ())),
                                preferred_element_type=jnp.float32)
        m = jnp.max(s, axis=-1, keepdims=True)
        p = jnp.exp(s - m)
        l = jnp.sum(p, axis=-1, keepdims=True)
        att = p * pl.reciprocal(l, approx=True)   # EUP reciprocal, not a divide
        att_ref[0, h] = att.astype(att_ref.dtype)
        outs.append(jnp.dot(att.astype(vh.dtype), vh,
                            preferred_element_type=jnp.float32))
    # Single lane-dense store of the concatenated heads.
    o_ref[0] = jnp.concatenate(outs, axis=-1).astype(o_ref.dtype)


def attention(qkv, num_heads):
    """qkv: (B, T, 3D) packed Q|K|V -> (out (B,T,D) bf16, att (B,H,T,T) bf16)."""
    B, T, threeD = qkv.shape
    D = threeD // 3
    return pl.pallas_call(
        functools.partial(_attention_kernel, num_heads=num_heads, dim=D),
        out_shape=(jax.ShapeDtypeStruct((B, T, D), jnp.bfloat16),
                   jax.ShapeDtypeStruct((B, num_heads, T, T), jnp.bfloat16)),
        grid=(B,),
        in_specs=[pl.BlockSpec((1, T, threeD), lambda b: (b, 0, 0))],
        out_specs=(pl.BlockSpec((1, T, D), lambda b: (b, 0, 0)),
                   pl.BlockSpec((1, num_heads, T, T), lambda b: (b, 0, 0, 0))),
        compiler_params=_cparams(("parallel",)),
    )(qkv)


# ----------------------------------------------------------------------------
# Depthwise conv over time + eval-BatchNorm + Swish.  Taps are generated with
# pltpu.roll (XLU) + iota edge masks: no padded-copy concatenate, no per-tap
# sublane-slice relayouts.
# ----------------------------------------------------------------------------

def _dwconv_bn_swish_kernel(x_ref, w_ref, scale_ref, shift_ref, o_ref, *, ksize):
    x = x_ref[0].astype(jnp.float32)              # (T, D)
    T = x.shape[0]
    pad = (ksize - 1) // 2
    w = w_ref[...].astype(jnp.float32)            # (K, D)
    t_idx = jax.lax.broadcasted_iota(jnp.int32, (T, 1), 0)
    acc = jnp.zeros_like(x)
    for k in range(ksize):                        # small K, statically unrolled
        shift = pad - k                           # y[t] += w[k] * x[t + k - pad]
        if shift == 0:
            term = x
        else:
            rolled = pltpu.roll(x, shift=shift % T, axis=0)   # XLU sublane roll
            valid = (t_idx >= shift) & (t_idx < T + shift)    # zero-pad edges
            term = jnp.where(valid, rolled, 0.0)
        acc = acc + term * w[k][None, :]
    y = acc * scale_ref[...] + shift_ref[...]     # conv bias + eval BatchNorm folded
    y = y * jax.nn.sigmoid(y)                     # Swish
    o_ref[0] = y.astype(o_ref.dtype)


def depthwise_conv_bn_swish(x, w, scale, shift):
    """x: (B, T, D) -> (B, T, D) bf16."""
    # TODO(synk): tile over T (with kernel-size halos) for very long sequences.
    B, T, D = x.shape
    K = w.shape[0]
    return pl.pallas_call(
        functools.partial(_dwconv_bn_swish_kernel, ksize=K),
        out_shape=jax.ShapeDtypeStruct((B, T, D), jnp.bfloat16),
        grid=(B,),
        in_specs=[
            pl.BlockSpec((1, T, D), lambda b: (b, 0, 0)),
            pl.BlockSpec((K, D), lambda b: (0, 0)),
            pl.BlockSpec((1, D), lambda b: (0, 0)),
            pl.BlockSpec((1, D), lambda b: (0, 0)),
        ],
        out_specs=pl.BlockSpec((1, T, D), lambda b: (b, 0, 0)),
        compiler_params=_cparams(("parallel",)),
    )(x, w, scale, shift)


# ----------------------------------------------------------------------------
# Conv2dSubsampling layer: im2col (XLA glue) + Pallas matmul + fused ReLU
# ----------------------------------------------------------------------------

def conv2d_subsample_layer(x, w2, b):
    """NCHW conv2d, kernel 3x3, stride 2, padding 1, ReLU.
    x: (B, Cin, H, W); w2: (Cin*9, Cout) pre-reshaped; b: (1, Cout)."""
    B, Cin, H, W = x.shape
    Cout = w2.shape[1]
    Ho = (H + 2 - 3) // 2 + 1
    Wo = (W + 2 - 3) // 2 + 1
    xp = jnp.pad(x, ((0, 0), (0, 0), (1, 1), (1, 1)))
    cols = []
    for kh in range(3):
        for kw in range(3):
            cols.append(xp[:, :, kh:kh + 2 * Ho:2, kw:kw + 2 * Wo:2])  # (B,Cin,Ho,Wo)
    patches = jnp.stack(cols, axis=2)                    # (B, Cin, 9, Ho, Wo)
    patches = patches.transpose(0, 3, 4, 1, 2).reshape(B * Ho * Wo, Cin * 9)
    y = fused_matmul(patches, w2, b, activation="relu")  # Pallas matmul + ReLU
    y = y.reshape(B, Ho, Wo, Cout).transpose(0, 3, 1, 2)  # back to NCHW
    return y


# ----------------------------------------------------------------------------
# Conformer block (FFN/2 -> MHSA -> Conv module -> FFN/2 -> LayerNorm)
# ----------------------------------------------------------------------------

def conformer_block(p, xf, B, T):
    """xf: (B*T, D) flattened f32 activations -> (xf, att (B, H, T, T))."""
    D = xf.shape[1]
    H = p["num_heads"]

    # --- Feed-forward module 1 (LN fused into W1, half-step residual fused into W2) ---
    h = fused_matmul(xf, p["ffn1_w1"], p["ffn1_b1"],
                     gamma=p["ffn1_ln_g"], beta=p["ffn1_ln_b"],
                     activation="silu", out_dtype=jnp.bfloat16)
    xf = matmul_residual(h, p["ffn1_w2"], p["ffn1_b2"], xf, scale=0.5)

    # --- MHSA: fused LN + QKV matmul, per-batch all-head attention, out-proj + residual ---
    qkv = fused_matmul(xf, p["wqkv"], p["bqkv"],
                       gamma=p["mhsa_ln_g"], beta=p["mhsa_ln_b"],
                       out_dtype=jnp.bfloat16)
    o, att = attention(qkv.reshape(B, T, 3 * D), H)
    xf = matmul_residual(o.reshape(B * T, D), p["wo"], p["bo"], xf, scale=1.0)

    # --- Convolution module ---
    y = ln_glu_matmul(xf, p["pw1_wa"], p["pw1_ba"], p["pw1_wg"], p["pw1_bg"],
                      gamma=p["conv_ln_g"], beta=p["conv_ln_b"])
    y = depthwise_conv_bn_swish(y.reshape(B, T, D),
                                p["dw_w"], p["dw_scale"], p["dw_shift"])
    xf = matmul_residual(y.reshape(B * T, D), p["pw2_w"], p["pw2_b"], xf, scale=1.0)

    # --- Feed-forward module 2 + final block LayerNorm (fused into the epilogue) ---
    h = fused_matmul(xf, p["ffn2_w1"], p["ffn2_b1"],
                     gamma=p["ffn2_ln_g"], beta=p["ffn2_ln_b"],
                     activation="silu", out_dtype=jnp.bfloat16)
    xf = matmul_residual(h, p["ffn2_w2"], p["ffn2_b2"], xf, scale=0.5,
                         gamma=p["out_ln_g"], beta=p["out_ln_b"])
    return xf, att


# ----------------------------------------------------------------------------
# Full encoder forward
# ----------------------------------------------------------------------------

def conformer_encoder_forward(params, x, x_len):
    """x: (B, n_mels, T) log-mel features; returns (x, x_len, attentions)."""
    B, F, T = x.shape

    # Conv2dSubsampling (each layer halves F and T)
    h = x[:, None, :, :]                          # (B, 1, F, T) NCHW
    for (w2, b) in params["conv2d"]:
        h = conv2d_subsample_layer(h, w2, b)
        if x_len is not None:
            x_len = (x_len - 1) // 2 + 1          # matches torch.div(..., 'floor')

    Bc, C, Fp, Tp = h.shape
    h = h.reshape(Bc, C * Fp, Tp).transpose(0, 2, 1)   # (B, T', C*F')

    # StreamingMask: full context + full-length utterances -> all-valid mask,
    # so attention runs unmasked.

    D = params["linear_w"].shape[1]
    h2 = fused_matmul(h.reshape(Bc * Tp, C * Fp),
                      params["linear_w"], params["linear_b"])
    # Dropout: identity (eval)

    attentions = []
    for blk in params["blocks"]:
        h2, att = conformer_block(blk, h2, Bc, Tp)
        attentions.append(att)
        # block.stride == 1 -> no mask / x_len down-sampling here
    return h2.reshape(Bc, Tp, D), x_len, attentions


# ----------------------------------------------------------------------------
# Deterministic parameter initialization
# ----------------------------------------------------------------------------

def init_encoder_params(key, cfg):
    keys = iter(jax.random.split(key, 512))

    def nrm(shape, scale=0.05):
        return (scale * jax.random.normal(next(keys), shape)).astype(jnp.float32)

    D = cfg["dim_model"]
    ff = cfg["ff_ratio"]
    H = cfg["num_heads"]
    K = cfg["kernel_size"]
    bn_eps = 1e-5

    params = {}

    # Conv2dSubsampling: weights pre-reshaped to (Cin*9, Cout), kept f32 (tiny).
    conv_params = []
    cin = 1
    for f in cfg["filters"]:
        w = nrm((f, cin, 3, 3), 0.1)
        b = nrm((f,), 0.1)
        conv_params.append((w.reshape(f, cin * 9).T, b.reshape(1, f)))
        cin = f
    params["conv2d"] = conv_params

    # Projection linear: filters[-1] * n_mels // 2**num_layers -> dim_model
    in_feat = cfg["filters"][-1] * cfg["n_mels"] // (2 ** len(cfg["filters"]))
    params["linear_w"] = nrm((in_feat, D)).astype(jnp.bfloat16)
    params["linear_b"] = nrm((D,)).reshape(1, D)

    ones = jnp.ones((1, D), jnp.float32)
    zeros = jnp.zeros((1, D), jnp.float32)
    att_scale = 1.0 / math.sqrt(D // H)
    bn_scale = 1.0 / math.sqrt(1.0 + bn_eps)      # BN eval with default stats/affine

    blocks = []
    for _ in range(cfg["num_blocks"]):
        # Fused QKV weight; the 1/sqrt(Dh) attention scale is folded into Wq/bq.
        wq, wk, wv = nrm((D, D)), nrm((D, D)), nrm((D, D))
        bq, bk, bv = nrm((D,)), nrm((D,)), nrm((D,))
        wqkv = jnp.concatenate([wq * att_scale, wk, wv], axis=1).astype(jnp.bfloat16)
        bqkv = jnp.concatenate([bq * att_scale, bk, bv]).reshape(1, 3 * D)
        dw_bias = nrm((D,), 0.05)
        p = {
            "num_heads": H,
            # FFN 1
            "ffn1_ln_g": ones, "ffn1_ln_b": zeros,
            "ffn1_w1": nrm((D, ff * D)).astype(jnp.bfloat16),
            "ffn1_b1": nrm((ff * D,)).reshape(1, ff * D),
            "ffn1_w2": nrm((ff * D, D)).astype(jnp.bfloat16),
            "ffn1_b2": nrm((D,)).reshape(1, D),
            # MHSA
            "mhsa_ln_g": ones, "mhsa_ln_b": zeros,
            "wqkv": wqkv, "bqkv": bqkv,
            "wo": nrm((D, D)).astype(jnp.bfloat16), "bo": nrm((D,)).reshape(1, D),
            # Conv module (GLU weight split into two lane-aligned halves)
            "conv_ln_g": ones, "conv_ln_b": zeros,
            "pw1_wa": nrm((D, D)).astype(jnp.bfloat16), "pw1_ba": nrm((D,)).reshape(1, D),
            "pw1_wg": nrm((D, D)).astype(jnp.bfloat16), "pw1_bg": nrm((D,)).reshape(1, D),
            "dw_w": nrm((K, D)),                          # depthwise weights (K, D), VPU
            "dw_scale": jnp.full((1, D), bn_scale, jnp.float32),
            "dw_shift": (dw_bias * bn_scale).reshape(1, D),  # conv bias folded through BN
            "pw2_w": nrm((D, D)).astype(jnp.bfloat16), "pw2_b": nrm((D,)).reshape(1, D),
            # FFN 2
            "ffn2_ln_g": ones, "ffn2_ln_b": zeros,
            "ffn2_w1": nrm((D, ff * D)).astype(jnp.bfloat16),
            "ffn2_b1": nrm((ff * D,)).reshape(1, ff * D),
            "ffn2_w2": nrm((ff * D, D)).astype(jnp.bfloat16),
            "ffn2_b2": nrm((D,)).reshape(1, D),
            # block output LayerNorm (fused into the FFN2 residual kernel)
            "out_ln_g": ones, "out_ln_b": zeros,
        }
        blocks.append(p)
    params["blocks"] = blocks
    return params


# ----------------------------------------------------------------------------
# Main
# ----------------------------------------------------------------------------

if __name__ == "__main__":
    cfg = dict(
        n_mels=16,
        filters=(4, 8),          # Conv2dSubsampling: num_layers = 2
        dim_model=32,
        ff_ratio=4,
        num_heads=4,
        kernel_size=7,
        num_blocks=2,
        max_pos_encoding=64,
    )

    key = jax.random.PRNGKey(0)
    pkey, xkey = jax.random.split(key)
    params = init_encoder_params(pkey, cfg)

    B, T = 2, 32
    # layout: (B, n_mels, T) log-mel features (PyTorch AudioPreprocessing output)
    x = jax.random.normal(xkey, (B, cfg["n_mels"], T), dtype=jnp.float32)
    x_len = jnp.array([T, T], dtype=jnp.int32)

    out, out_len, attentions = conformer_encoder_forward(params, x, x_len)

    jax.block_until_ready(out)
    jax.block_until_ready(out_len)
    for a in attentions:
        jax.block_until_ready(a)

    assert out.shape == (B, T // 4, cfg["dim_model"]), out.shape
    assert all(a.shape == (B, cfg["num_heads"], T // 4, T // 4) for a in attentions)
    print("KERNEL_OK")
</pallas_src>

<mosaic_0001>
module attributes {stable_mosaic.version = 11 : i64} {
  func.func @_fused_matmul_kernel(%arg0: i32, %arg1: memref<256x9xf32, #tpu.memory_space<vmem>>, %arg2: memref<9x4xf32, #tpu.memory_space<vmem>>, %arg3: memref<1x4xf32, #tpu.memory_space<vmem>>, %arg4: memref<256x4xf32, #tpu.memory_space<vmem>>) attributes {dimension_semantics = [#tpu.dimension_semantics<parallel>], iteration_bounds = array<i64: 1>, scalar_prefetch = 0 : i64, scratch_operands = 0 : i64, tpu.core_type = #tpu.core_type<tc>, window_params = [{transform_indices = @transform_0, window_bounds = array<i64: 256, 9>}, {pipeline_mode = #tpu.pipeline_mode<synchronous>, transform_indices = @transform_1, window_bounds = array<i64: 9, 4>}, {pipeline_mode = #tpu.pipeline_mode<synchronous>, transform_indices = @transform_2, window_bounds = array<i64: 1, 4>}, {transform_indices = @transform_3, window_bounds = array<i64: 256, 4>}]} {
    %c0 = arith.constant 0 : index
    %c0_0 = arith.constant 0 : index
    %0 = vector.load %arg1[%c0, %c0_0] : memref<256x9xf32, #tpu.memory_space<vmem>>, vector<256x9xf32>
    %c0_1 = arith.constant 0 : index
    %c0_2 = arith.constant 0 : index
    %1 = vector.load %arg2[%c0_1, %c0_2] : memref<9x4xf32, #tpu.memory_space<vmem>>, vector<9x4xf32>
    %cst = arith.constant dense<0.000000e+00> : vector<256x4xf32>
    %2 = tpu.matmul %0, %1, %cst {dimension_numbers = #tpu.dot_dimension_numbers<[1], [0], [0], [1], [0, 0, 1, 1], [], []>} : vector<256x9xf32>, vector<9x4xf32>, vector<256x4xf32> -> vector<256x4xf32>
    %c0_3 = arith.constant 0 : index
    %c0_4 = arith.constant 0 : index
    %3 = vector.load %arg3[%c0_3, %c0_4] : memref<1x4xf32, #tpu.memory_space<vmem>>, vector<1x4xf32>
    %4 = vector.broadcast %3 : vector<1x4xf32> to vector<256x4xf32>
    %5 = arith.addf %2, %4 : vector<256x4xf32>
    %cst_5 = arith.constant 0.000000e+00 : f32
    %6 = vector.broadcast %cst_5 : f32 to vector<256x4xf32>
    %7 = arith.maximumf %5, %6 : vector<256x4xf32>
    %c0_6 = arith.constant 0 : index
    %c0_7 = arith.constant 0 : index
    %8 = vector.load %arg4[%c0_6, %c0_7] : memref<256x4xf32, #tpu.memory_space<vmem>>, vector<256x4xf32>
    tpu.vector_store %arg4[%c0_6, %c0_7], %7 {strides = array<i32>} : memref<256x4xf32, #tpu.memory_space<vmem>>, vector<256x4xf32>,
    return
  }
  func.func @transform_0(%arg0: i32) -> (i32, i32) {
    %c0_i32 = arith.constant 0 : i32
    %c0_i32_0 = arith.constant 0 : i32
    return %arg0, %c0_i32 : i32, i32
  }
  func.func @transform_1(%arg0: i32) -> (i32, i32) {
    %c0_i32 = arith.constant 0 : i32
    %c0_i32_0 = arith.constant 0 : i32
    %c0_i32_1 = arith.constant 0 : i32
    return %c0_i32, %c0_i32_0 : i32, i32
  }
  func.func @transform_2(%arg0: i32) -> (i32, i32) {
    %c0_i32 = arith.constant 0 : i32
    %c0_i32_0 = arith.constant 0 : i32
    %c0_i32_1 = arith.constant 0 : i32
    return %c0_i32, %c0_i32_0 : i32, i32
  }
  func.func @transform_3(%arg0: i32) -> (i32, i32) {
    %c0_i32 = arith.constant 0 : i32
    %c0_i32_0 = arith.constant 0 : i32
    return %arg0, %c0_i32 : i32, i32
  }
}

</mosaic_0001>

<bundles_post_ra>
// kernel: tpu_custom_call.1
= control target key start
LH: loop header
LB: loop body
LE: loop exit
PB: predicated region body
PF: predicated region fallthrough
CT: control target
= control target key end

     0   :  { %vm149_vm0 = vcmask 1040384   ;;  %vm52_vm1 = vcmask 72704   ;;  %vm298_vm2 = vcmask 31744   ;;  %s694_s1 = inlined_call_operand.vmem [shape: f32[9,4], index: 1, kind: input, shape index: {}]   ;;  %s695_s0 = inlined_call_operand.vmem [shape: f32[256,9], index: 0, kind: input, shape index: {}]   ;;  %s696_s2 = inlined_call_operand.vmem [shape: f32[1,4], index: 2, kind: input, shape index: {}]   ;;  %s697_s3 = inlined_call_operand.vmem [shape: f32[256,4], index: 3, kind: output, shape index: {}]  }
   0x1   :  { %v47_v0 = vld [vmem:[%s694_s1 + $0x8] sm:$0x1]  ;;  %v46_v1 = vld [vmem:[%s694_s1] sm:$0xff]  ;;  %v32_v10 = vld [vmem:[%s695_s0 + $0x90] sm:$0xff] }
   0x2   :  { %369 = vmatpush.msk.msra.mxu2 %vm149_vm0, %v47_v0  ;;  %370 = vmatpush.msk.msra.mxu3 %vm149_vm0, %v47_v0  ;;  %v30_v2 = vld [vmem:[%s695_s0 + $0x80] sm:$0xff]  ;;  %v31_v6 = vld [vmem:[%s695_s0 + $0x88] sm:$0xff]  ;;  %v40_v11 = vld [vmem:[%s695_s0 + $0xd0] sm:$0xff] }
   0x3   :  { %v38_v3 = vld [vmem:[%s695_s0 + $0xc0] sm:$0xff]  ;;  %335 = vmatpush.msk.msra.mxu0 %vm149_vm0, %v47_v0  ;;  %368 = vmatpush.msk.msra.mxu1 %vm149_vm0, %v47_v0  ;;  %v39_v7 = vld [vmem:[%s695_s0 + $0xc8] sm:$0xff]  ;;  %v16_v12 = vld [vmem:[%s695_s0 + $0x10] sm:$0xff] }
   0x4   :  { %372 = vmatpush.msra.mxu2 %v46_v1  ;;  %373 = vmatpush.msra.mxu3 %v46_v1  ;;  %v14_v4 = vld [vmem:[%s695_s0] sm:$0xff]  ;;  %v15_v8 = vld [vmem:[%s695_s0 + $0x8] sm:$0xff]  ;;  %v24_v13 = vld [vmem:[%s695_s0 + $0x50] sm:$0xff] }
   0x5   :  { %v22_v5 = vld [vmem:[%s695_s0 + $0x40] sm:$0xff]  ;;  %352 = vmatmul.msk.f32.vlgmr.msra.gmra.mxu2 %vm52_vm1, %v30_v2  ;;  %360 = vmatmul.msk.f32.vlgmr.msra.gmra.mxu3 %vm52_vm1, %v38_v3  ;;  %v23_v9 = vld [vmem:[%s695_s0 + $0x48] sm:$0xff]  ;;  %v33_v14 = vld [vmem:[%s695_s0 + $0x98] sm:$0xff] }
   0x6   :  { %168 = vmatpush.msra.mxu0 %v46_v1  ;;  %371 = vmatpush.msra.mxu1 %v46_v1  ;;  %v41_v15 = vld [vmem:[%s695_s0 + $0xd8] sm:$0xff]  ;;  %v34_v18 = vld [vmem:[%s695_s0 + $0xa0] sm:$0xff]  ;;  %v35_v22 = vld [vmem:[%s695_s0 + $0xa8] sm:$0xff] }
   0x7   :  { %336 = vmatmul.msk.f32.vlgmr.msra.gmra.mxu0 %vm52_vm1, %v14_v4  ;;  %344 = vmatmul.msk.f32.vlgmr.msra.gmra.mxu1 %vm52_vm1, %v22_v5  ;;  %v17_v16 = vld [vmem:[%s695_s0 + $0x18] sm:$0xff]  ;;  %v42_v19 = vld [vmem:[%s695_s0 + $0xe0] sm:$0xff]  ;;  %v43_v23 = vld [vmem:[%s695_s0 + $0xe8] sm:$0xff] }
   0x8   :  { %v25_v17 = vld [vmem:[%s695_s0 + $0x58] sm:$0xff]  ;;  %v18_v20 = vld [vmem:[%s695_s0 + $0x20] sm:$0xff]  ;;  %v19_v24 = vld [vmem:[%s695_s0 + $0x28] sm:$0xff] }
   0x9   :  { %v26_v21 = vld [vmem:[%s695_s0 + $0x60] sm:$0xff]  ;;  %v27_v25 = vld [vmem:[%s695_s0 + $0x68] sm:$0xff]  ;;  %v36_v26 = vld [vmem:[%s695_s0 + $0xb0] sm:$0xff] }
   0xa   :  { %v44_v27 = vld [vmem:[%s695_s0 + $0xf0] sm:$0xff]  ;;  %v37_v30 = vld [vmem:[%s695_s0 + $0xb8] sm:$0xff]  ;;  %v532_v34 = vld [vmem:[%s696_s2] ss:$0 sm:$0xff] }
   0xb   :  { %v20_v28 = vld [vmem:[%s695_s0 + $0x30] sm:$0xff]  ;;  %v45_v31 = vld [vmem:[%s695_s0 + $0xf8] sm:$0xff] }
   0xc   :  { %v28_v29 = vld [vmem:[%s695_s0 + $0x70] sm:$0xff]  ;;  %v21_v32 = vld [vmem:[%s695_s0 + $0x38] sm:$0xff] }
   0xd   :  { %353 = vmatmul.msk.f32.gmra.mxu2 %vm52_vm1, %v31_v6  ;;  %361 = vmatmul.msk.f32.gmra.mxu3 %vm52_vm1, %v39_v7  ;;  %v29_v33 = vld [vmem:[%s695_s0 + $0x78] sm:$0xff] }
   0xf   :  { %337 = vmatmul.msk.f32.gmra.mxu0 %vm52_vm1, %v15_v8  ;;  %345 = vmatmul.msk.f32.gmra.mxu1 %vm52_vm1, %v23_v9 }
  0x15   :  { %354 = vmatmul.msk.f32.gmra.mxu2 %vm52_vm1, %v32_v10  ;;  %362 = vmatmul.msk.f32.gmra.mxu3 %vm52_vm1, %v40_v11 }
  0x17   :  { %338 = vmatmul.msk.f32.gmra.mxu0 %vm52_vm1, %v16_v12  ;;  %346 = vmatmul.msk.f32.gmra.mxu1 %vm52_vm1, %v24_v13 }
  0x1d   :  { %355 = vmatmul.msk.f32.gmra.mxu2 %vm52_vm1, %v33_v14  ;;  %363 = vmatmul.msk.f32.gmra.mxu3 %vm52_vm1, %v41_v15 }
  0x1f   :  { %339 = vmatmul.msk.f32.gmra.mxu0 %vm52_vm1, %v17_v16  ;;  %347 = vmatmul.msk.f32.gmra.mxu1 %vm52_vm1, %v25_v17 }
  0x25   :  { %356 = vmatmul.msk.f32.gmra.mxu2 %vm52_vm1, %v34_v18  ;;  %364 = vmatmul.msk.f32.gmra.mxu3 %vm52_vm1, %v42_v19 }
  0x27   :  { %340 = vmatmul.msk.f32.gmra.mxu0 %vm52_vm1, %v18_v20  ;;  %348 = vmatmul.msk.f32.gmra.mxu1 %vm52_vm1, %v26_v21 }
  0x2d   :  { %357 = vmatmul.msk.f32.gmra.mxu2 %vm52_vm1, %v35_v22  ;;  %365 = vmatmul.msk.f32.gmra.mxu3 %vm52_vm1, %v43_v23 }
  0x2f   :  { %341 = vmatmul.msk.f32.gmra.mxu0 %vm52_vm1, %v19_v24  ;;  %349 = vmatmul.msk.f32.gmra.mxu1 %vm52_vm1, %v27_v25 }
  0x35   :  { %358 = vmatmul.msk.f32.gmra.mxu2 %vm52_vm1, %v36_v26  ;;  %366 = vmatmul.msk.f32.gmra.mxu3 %vm52_vm1, %v44_v27 }
  0x37   :  { %342 = vmatmul.msk.f32.gmra.mxu0 %vm52_vm1, %v20_v28  ;;  %350 = vmatmul.msk.f32.gmra.mxu1 %vm52_vm1, %v28_v29 }
  0x3d   :  { %359 = vmatmul.msk.f32.gmra.mxu2 %vm52_vm1, %v37_v30  ;;  %367 = vmatmul.msk.f32.gmra.mxu3 %vm52_vm1, %v45_v31 }
  0x3f   :  { %343 = vmatmul.msk.f32.gmra.mxu0 %vm52_vm1, %v21_v32  ;;  %351 = vmatmul.msk.f32.gmra.mxu1 %vm52_vm1, %v29_v33 }
  0x84   :  { %v170_v35 = vpop.f32.mrf.mxu0  ;;  %v194_v36 = vpop.f32.mrf.mxu1 }
  0x85   :  { %v171_v37 = vadd.f32 %v532_v34, %v170_v35  ;;  %v195_v38 = vadd.f32 %v532_v34, %v194_v36 }
  0x87   :  { %v266_v39 = vmax.f32 %v171_v37, 0.0  ;;  %v274_v40 = vmax.f32 %v195_v38, 0.0 }
  0x88   :  { %v218_v41 = vpop.f32.mrf.mxu2  ;;  %v242_v42 = vpop.f32.mrf.mxu3 }
  0x89   :  { %299 = vst.msk [vmem:[%s697_s3] sm:$0xff] %vm298_vm2, %v266_v39  ;;  %v219_v43 = vadd.f32 %v532_v34, %v218_v41  ;;  %v243_v44 = vadd.f32 %v532_v34, %v242_v42 }
  0x8a   :  { %307 = vst.msk [vmem:[%s697_s3 + $0x40] sm:$0xff] %vm298_vm2, %v274_v40 }
  0x8b   :  { %v282_v45 = vmax.f32 %v219_v43, 0.0  ;;  %v290_v46 = vmax.f32 %v243_v44, 0.0 }
  0x8c   :  { %v173_v47 = vpop.f32.mrf.mxu0  ;;  %v197_v48 = vpop.f32.mrf.mxu1 }
  0x8d   :  { %315 = vst.msk [vmem:[%s697_s3 + $0x80] sm:$0xff] %vm298_vm2, %v282_v45  ;;  %v174_v49 = vadd.f32 %v532_v34, %v173_v47  ;;  %v198_v50 = vadd.f32 %v532_v34, %v197_v48 }
  0x8e   :  { %323 = vst.msk [vmem:[%s697_s3 + $0xc0] sm:$0xff] %vm298_vm2, %v290_v46 }
  0x8f   :  { %v267_v51 = vmax.f32 %v174_v49, 0.0  ;;  %v275_v52 = vmax.f32 %v198_v50, 0.0 }
  0x90   :  { %v221_v53 = vpop.f32.mrf.mxu2  ;;  %v245_v54 = vpop.f32.mrf.mxu3 }
  0x91   :  { %300 = vst.msk [vmem:[%s697_s3 + $0x8] sm:$0xff] %vm298_vm2, %v267_v51  ;;  %v222_v55 = vadd.f32 %v532_v34, %v221_v53  ;;  %v246_v56 = vadd.f32 %v532_v34, %v245_v54 }
  0x92   :  { %308 = vst.msk [vmem:[%s697_s3 + $0x48] sm:$0xff] %vm298_vm2, %v275_v52 }
  0x93   :  { %v283_v57 = vmax.f32 %v222_v55, 0.0  ;;  %v291_v58 = vmax.f32 %v246_v56, 0.0 }
  0x94   :  { %v176_v59 = vpop.f32.mrf.mxu0  ;;  %v200_v60 = vpop.f32.mrf.mxu1 }
  0x95   :  { %316 = vst.msk [vmem:[%s697_s3 + $0x88] sm:$0xff] %vm298_vm2, %v283_v57  ;;  %v177_v61 = vadd.f32 %v532_v34, %v176_v59  ;;  %v201_v62 = vadd.f32 %v532_v34, %v200_v60 }
  0x96   :  { %324 = vst.msk [vmem:[%s697_s3 + $0xc8] sm:$0xff] %vm298_vm2, %v291_v58 }
  0x97   :  { %v268_v63 = vmax.f32 %v177_v61, 0.0  ;;  %v276_v0 = vmax.f32 %v201_v62, 0.0 }
  0x98   :  { %v224_v1 = vpop.f32.mrf.mxu2  ;;  %v248_v2 = vpop.f32.mrf.mxu3 }
  0x99   :  { %301 = vst.msk [vmem:[%s697_s3 + $0x10] sm:$0xff] %vm298_vm2, %v268_v63  ;;  %v225_v3 = vadd.f32 %v532_v34, %v224_v1  ;;  %v249_v4 = vadd.f32 %v532_v34, %v248_v2 }
  0x9a   :  { %309 = vst.msk [vmem:[%s697_s3 + $0x50] sm:$0xff] %vm298_vm2, %v276_v0 }
  0x9b   :  { %v284_v5 = vmax.f32 %v225_v3, 0.0  ;;  %v292_v6 = vmax.f32 %v249_v4, 0.0 }
  0x9c   :  { %v179_v7 = vpop.f32.mrf.mxu0  ;;  %v203_v8 = vpop.f32.mrf.mxu1 }
  0x9d   :  { %317 = vst.msk [vmem:[%s697_s3 + $0x90] sm:$0xff] %vm298_vm2, %v284_v5  ;;  %v180_v9 = vadd.f32 %v532_v34, %v179_v7  ;;  %v204_v10 = vadd.f32 %v532_v34, %v203_v8 }
  0x9e   :  { %325 = vst.msk [vmem:[%s697_s3 + $0xd0] sm:$0xff] %vm298_vm2, %v292_v6 }
  0x9f   :  { %v269_v11 = vmax.f32 %v180_v9, 0.0  ;;  %v277_v12 = vmax.f32 %v204_v10, 0.0 }
  0xa0   :  { %v227_v13 = vpop.f32.mrf.mxu2  ;;  %v251_v14 = vpop.f32.mrf.mxu3 }
  0xa1   :  { %302 = vst.msk [vmem:[%s697_s3 + $0x18] sm:$0xff] %vm298_vm2, %v269_v11  ;;  %v228_v15 = vadd.f32 %v532_v34, %v227_v13  ;;  %v252_v16 = vadd.f32 %v532_v34, %v251_v14 }
  0xa2   :  { %310 = vst.msk [vmem:[%s697_s3 + $0x58] sm:$0xff] %vm298_vm2, %v277_v12 }
  0xa3   :  { %v285_v17 = vmax.f32 %v228_v15, 0.0  ;;  %v293_v18 = vmax.f32 %v252_v16, 0.0 }
  0xa4   :  { %v182_v19 = vpop.f32.mrf.mxu0  ;;  %v206_v20 = vpop.f32.mrf.mxu1 }
  0xa5   :  { %318 = vst.msk [vmem:[%s697_s3 + $0x98] sm:$0xff] %vm298_vm2, %v285_v17  ;;  %v183_v21 = vadd.f32 %v532_v34, %v182_v19  ;;  %v207_v22 = vadd.f32 %v532_v34, %v206_v20 }
  0xa6   :  { %326 = vst.msk [vmem:[%s697_s3 + $0xd8] sm:$0xff] %vm298_vm2, %v293_v18 }
  0xa7   :  { %v270_v23 = vmax.f32 %v183_v21, 0.0  ;;  %v278_v24 = vmax.f32 %v207_v22, 0.0 }
  0xa8   :  { %v230_v25 = vpop.f32.mrf.mxu2  ;;  %v254_v26 = vpop.f32.mrf.mxu3 }
  0xa9   :  { %303 = vst.msk [vmem:[%s697_s3 + $0x20] sm:$0xff] %vm298_vm2, %v270_v23  ;;  %v231_v27 = vadd.f32 %v532_v34, %v230_v25  ;;  %v255_v28 = vadd.f32 %v532_v34, %v254_v26 }
  0xaa   :  { %311 = vst.msk [vmem:[%s697_s3 + $0x60] sm:$0xff] %vm298_vm2, %v278_v24 }
  0xab   :  { %v286_v29 = vmax.f32 %v231_v27, 0.0  ;;  %v294_v30 = vmax.f32 %v255_v28, 0.0 }
  0xac   :  { %v185_v31 = vpop.f32.mrf.mxu0  ;;  %v209_v32 = vpop.f32.mrf.mxu1 }
  0xad   :  { %319 = vst.msk [vmem:[%s697_s3 + $0xa0] sm:$0xff] %vm298_vm2, %v286_v29  ;;  %v186_v33 = vadd.f32 %v532_v34, %v185_v31  ;;  %v210_v35 = vadd.f32 %v532_v34, %v209_v32 }
  0xae   :  { %327 = vst.msk [vmem:[%s697_s3 + $0xe0] sm:$0xff] %vm298_vm2, %v294_v30 }
  0xaf   :  { %v271_v36 = vmax.f32 %v186_v33, 0.0  ;;  %v279_v37 = vmax.f32 %v210_v35, 0.0 }
  0xb0   :  { %v233_v38 = vpop.f32.mrf.mxu2  ;;  %v257_v39 = vpop.f32.mrf.mxu3 }
  0xb1   :  { %304 = vst.msk [vmem:[%s697_s3 + $0x28] sm:$0xff] %vm298_vm2, %v271_v36  ;;  %v234_v40 = vadd.f32 %v532_v34, %v233_v38  ;;  %v258_v41 = vadd.f32 %v532_v34, %v257_v39 }
  0xb2   :  { %312 = vst.msk [vmem:[%s697_s3 + $0x68] sm:$0xff] %vm298_vm2, %v279_v37 }
  0xb3   :  { %v287_v42 = vmax.f32 %v234_v40, 0.0  ;;  %v295_v43 = vmax.f32 %v258_v41, 0.0 }
  0xb4   :  { %v188_v44 = vpop.f32.mrf.mxu0  ;;  %v212_v45 = vpop.f32.mrf.mxu1 }
  0xb5   :  { %320 = vst.msk [vmem:[%s697_s3 + $0xa8] sm:$0xff] %vm298_vm2, %v287_v42  ;;  %v189_v46 = vadd.f32 %v532_v34, %v188_v44  ;;  %v213_v47 = vadd.f32 %v532_v34, %v212_v45 }
  0xb6   :  { %328 = vst.msk [vmem:[%s697_s3 + $0xe8] sm:$0xff] %vm298_vm2, %v295_v43 }
  0xb7   :  { %v272_v48 = vmax.f32 %v189_v46, 0.0  ;;  %v280_v49 = vmax.f32 %v213_v47, 0.0 }
  0xb8   :  { %v236_v50 = vpop.f32.mrf.mxu2  ;;  %v260_v51 = vpop.f32.mrf.mxu3 }
  0xb9   :  { %305 = vst.msk [vmem:[%s697_s3 + $0x30] sm:$0xff] %vm298_vm2, %v272_v48  ;;  %v237_v52 = vadd.f32 %v532_v34, %v236_v50  ;;  %v261_v53 = vadd.f32 %v532_v34, %v260_v51 }
  0xba   :  { %313 = vst.msk [vmem:[%s697_s3 + $0x70] sm:$0xff] %vm298_vm2, %v280_v49 }
  0xbb   :  { %v288_v54 = vmax.f32 %v237_v52, 0.0  ;;  %v296_v55 = vmax.f32 %v261_v53, 0.0 }
  0xbc   :  { %v191_v56 = vpop.f32.mrf.mxu0  ;;  %v215_v57 = vpop.f32.mrf.mxu1 }
  0xbd   :  { %321 = vst.msk [vmem:[%s697_s3 + $0xb0] sm:$0xff] %vm298_vm2, %v288_v54  ;;  %v192_v58 = vadd.f32 %v532_v34, %v191_v56  ;;  %v216_v59 = vadd.f32 %v532_v34, %v215_v57 }
  0xbe   :  { %329 = vst.msk [vmem:[%s697_s3 + $0xf0] sm:$0xff] %vm298_vm2, %v296_v55 }
  0xbf   :  { %v273_v60 = vmax.f32 %v192_v58, 0.0  ;;  %v281_v61 = vmax.f32 %v216_v59, 0.0 }
  0xc0   :  { %v239_v62 = vpop.f32.mrf.mxu2  ;;  %v263_v63 = vpop.f32.mrf.mxu3 }
  0xc1   :  { %306 = vst.msk [vmem:[%s697_s3 + $0x38] sm:$0xff] %vm298_vm2, %v273_v60  ;;  %v240_v0 = vadd.f32 %v532_v34, %v239_v62  ;;  %v264_v1 = vadd.f32 %v532_v34, %v263_v63 }
  0xc2   :  { %314 = vst.msk [vmem:[%s697_s3 + $0x78] sm:$0xff] %vm298_vm2, %v281_v61 }
  0xc3   :  { %v289_v2 = vmax.f32 %v240_v0, 0.0  ;;  %v297_v3 = vmax.f32 %v264_v1, 0.0 }
  0xc5   :  { %322 = vst.msk [vmem:[%s697_s3 + $0xb8] sm:$0xff] %vm298_vm2, %v289_v2 }
  0xc6   :  { %330 = vst.msk [vmem:[%s697_s3 + $0xf8] sm:$0xff] %vm298_vm2, %v297_v3 }

</bundles_post_ra>
